<compile_context>
chip_gen: v7x
topology: tpu7x:2x2x1
jax: 0.10.0
libtpu: 0.0.40
codegen_flags: <defaults>
</compile_context>

<pallas_src>
import numpy as np
import jax
import jax.numpy as jnp
from jax import lax
from jax.experimental import pallas as pl
from jax.experimental.pallas import tpu as pltpu

BN_EPS = 1e-4       # norm_cfg eps (inference BN folded into conv weights at init)
MERGE_EPS = 1e-4    # WeightedMerge eps
VMEM_LIMIT_BYTES = 32 * 1024 * 1024   # explicit scoped-VMEM budget, safe on v5e/v6e/v7x


def _row_tile(M, max_tile=1024):
    """Largest multiple-of-8 divisor of M that is <= max_tile and yields >= 2
    grid steps, so the Mosaic pipeliner overlaps DMA with compute and v7x can
    shard the 'parallel' axis across both TensorCores. Falls back to M."""
    upper = min(max_tile, M // 2)
    for t in range(upper, 7, -1):
        if M % t == 0 and t % 8 == 0:
            return t
    return M


# ----------------------------- Pallas kernels -----------------------------

def _pw_kernel(x_ref, w_ref, b_ref, o_ref):
    # (TM, Cin) @ (Cin, Cout) on the MXU + bias. BN is pre-folded into w/b.
    acc = jnp.dot(x_ref[...], w_ref[...], preferred_element_type=jnp.float32)
    o_ref[...] = acc + b_ref[...]


def pointwise_conv(x_nhwc, W, b):
    """1x1 conv (+bias, BN folded) as a row-tiled, pipelined Pallas matmul."""
    N, H, Wd, Cin = x_nhwc.shape
    Cout = W.shape[1]
    M = N * H * Wd
    TM = _row_tile(M)
    x2 = x_nhwc.reshape(M, Cin)
    out = pl.pallas_call(
        _pw_kernel,
        out_shape=jax.ShapeDtypeStruct((M, Cout), jnp.float32),
        grid=(M // TM,),
        in_specs=[
            pl.BlockSpec((TM, Cin), lambda i: (i, 0)),
            pl.BlockSpec((Cin, Cout), lambda i: (0, 0)),
            pl.BlockSpec((1, Cout), lambda i: (0, 0)),
        ],
        out_specs=pl.BlockSpec((TM, Cout), lambda i: (i, 0)),
        compiler_params=pltpu.CompilerParams(
            dimension_semantics=("parallel",),
            vmem_limit_bytes=VMEM_LIMIT_BYTES),
    )(x2, W, b.reshape(1, Cout))
    return out.reshape(N, H, Wd, Cout)


def _make_fused_merge_kernel(K, H, W, C):
    """Fused: weighted-sum(K) -> swish -> depthwise 3x3 -> pointwise 1x1 (+BN)."""

    def kernel(*args):
        # args: w_smem, dw, pw, pb, in_0..in_{K-1}, out, pad_scratch
        w_ref = args[0]                                  # (K,) in SMEM
        dw_ref, pw_ref, pb_ref = args[1], args[2], args[3]
        in_refs = args[4:4 + K]                          # each (1, H, W, C)
        o_ref = args[4 + K]                              # (1, H*W, C)
        pad_ref = args[4 + K + 1]                        # (H+2, W+2, C) VMEM scratch

        # 1) weighted sum of the K resampled inputs (scalar weights from SMEM).
        acc = w_ref[0] * in_refs[0][0]
        for k in range(1, K):
            acc = acc + w_ref[k] * in_refs[k][0]

        # 2) swish = x * sigmoid(x), numerically-safe form in f32.
        e = jnp.exp(-jnp.abs(acc))
        sig = jnp.where(acc >= 0.0, 1.0 / (1.0 + e), e / (1.0 + e))
        x = acc * sig

        # 3) zero-pad into VMEM scratch (padding never touches HBM).
        pad_ref[...] = jnp.zeros_like(pad_ref)
        pad_ref[1:H + 1, 1:W + 1, :] = x

        # 4) depthwise 3x3: 9 shifted taps read straight from the padded scratch.
        dwv = dw_ref[...]                                # (9, C)
        dacc = jnp.zeros((H, W, C), jnp.float32)
        for dh in range(3):
            for dwi in range(3):
                tap = pad_ref[dh:dh + H, dwi:dwi + W, :]
                dacc = dacc + tap * dwv[3 * dh + dwi]

        # 5) pointwise 1x1 conv on the MXU (+bias, BN pre-folded); single store.
        y = jnp.dot(dacc.reshape(H * W, C), pw_ref[...],
                    preferred_element_type=jnp.float32) + pb_ref[...]
        o_ref[0] = y

    return kernel


def fused_weighted_merge(w, inputs, dw_w, pw_w, pw_b):
    """out = pw1x1(dw3x3(swish(sum_k w[k]*inputs[k]))) in one pallas_call."""
    K = len(inputs)
    N, H, W, C = inputs[0].shape
    kernel = _make_fused_merge_kernel(K, H, W, C)
    in_specs = [pl.BlockSpec(memory_space=pltpu.MemorySpace.SMEM)]        # merge weights
    in_specs += [
        pl.BlockSpec((9, C), lambda n: (0, 0)),                           # dw taps
        pl.BlockSpec((C, C), lambda n: (0, 0)),                           # pw weight
        pl.BlockSpec((1, C), lambda n: (0, 0)),                           # pw bias (BN folded)
    ]
    in_specs += [pl.BlockSpec((1, H, W, C), lambda n: (n, 0, 0, 0)) for _ in range(K)]
    # TODO(synk): for production resolutions also tile H with a 1-row halo
    # (and fold the nearest upsample of coarse inputs into this kernel).
    out = pl.pallas_call(
        kernel,
        out_shape=jax.ShapeDtypeStruct((N, H * W, C), jnp.float32),
        grid=(N,),
        in_specs=in_specs,
        out_specs=pl.BlockSpec((1, H * W, C), lambda n: (n, 0, 0)),
        scratch_shapes=[pltpu.VMEM((H + 2, W + 2, C), jnp.float32)],
        compiler_params=pltpu.CompilerParams(
            dimension_semantics=("parallel",),
            vmem_limit_bytes=VMEM_LIMIT_BYTES),
    )(w.astype(jnp.float32), dw_w.reshape(9, C), pw_w, pw_b.reshape(1, C), *inputs)
    return out.reshape(N, H, W, C)


# ----------------------------- plain-JAX glue ------------------------------

def _resize(x, target):
    # TODO(synk): nearest upsample / max-pool downsample kept in plain JAX
    # (jnp.repeat / lax.reduce_window) -- pure data rearrangement glue.
    H = x.shape[1]
    if H == target:
        return x
    if H < target:
        assert target % H == 0
        f = target // H
        return jnp.repeat(jnp.repeat(x, f, axis=1), f, axis=2)
    # downsample: max_pool2d(kernel=k+1, stride=k, padding=1), -inf padded (PyTorch)
    assert H % target == 0 and x.shape[2] % target == 0
    k = H // target
    return lax.reduce_window(
        x, -jnp.inf, lax.max,
        window_dimensions=(1, k + 1, k + 1, 1),
        window_strides=(1, k, k, 1),
        padding=((0, 0), (1, 1), (1, 1), (0, 0)),
    )


# ------------------------- parameter initialization ------------------------

def key_gen(seed):
    key = jax.random.PRNGKey(seed)

    def nxt():
        nonlocal key
        key, sub = jax.random.split(key)
        return sub

    return nxt


def _bn_scale_shift(c):
    # inference BN with gamma=1, beta=0, running_mean=0, running_var=1
    scale = jnp.full((c,), 1.0 / np.sqrt(1.0 + BN_EPS), jnp.float32)
    shift = jnp.zeros((c,), jnp.float32)
    return scale, shift


def init_resample(kg, in_c, out_c, target, apply_bn):
    p = {"target": int(target), "conv": None}
    if in_c != out_c:
        W = 0.1 * jax.random.normal(kg(), (in_c, out_c), jnp.float32)
        b = 0.1 * jax.random.normal(kg(), (out_c,), jnp.float32)
        if apply_bn:
            # Fold inference-mode BN into the conv weights (affine fold).
            scale, shift = _bn_scale_shift(out_c)
            W = W * scale[None, :]
            b = b * scale + shift
        p["conv"] = (W, b)
    return p


def init_weighted_merge(kg, in_channels_list, out_c, target):
    bn_scale, bn_shift = _bn_scale_shift(out_c)
    pw_w = 0.1 * jax.random.normal(kg(), (out_c, out_c), jnp.float32)
    pw_b = 0.1 * jax.random.normal(kg(), (out_c,), jnp.float32)
    return {
        "weight": jnp.ones((len(in_channels_list),), jnp.float32),
        "resample": [init_resample(kg, c, out_c, target, apply_bn=True)
                     for c in in_channels_list],
        # SeparableConv2d: depthwise 3x3 (no bias) -> pointwise 1x1 (+bias) -> BN
        # BN folded into the pointwise weights/bias.
        "dw_w": 0.1 * jax.random.normal(kg(), (3, 3, out_c), jnp.float32),
        "pw_w": pw_w * bn_scale[None, :],
        "pw_b": pw_b * bn_scale + bn_shift,
    }


def init_bifpn_layer(kg, in_channels, out_channels, target_size_list, num_outs):
    top_down = []
    for i in range(num_outs - 1, 0, -1):
        if i < num_outs - 1:
            in_list = [out_channels, in_channels[i - 1]]
        else:
            in_list = [in_channels[i], in_channels[i - 1]]
        top_down.append(init_weighted_merge(kg, in_list, out_channels,
                                            target_size_list[i - 1]))
    bottom_up = []
    for i in range(0, num_outs - 1):
        if i < num_outs - 2:
            in_list = [out_channels, in_channels[i + 1], out_channels]
        else:
            in_list = [in_channels[-1], out_channels]
        bottom_up.append(init_weighted_merge(kg, in_list, out_channels,
                                             target_size_list[i + 1]))
    return {"top_down": top_down, "bottom_up": bottom_up, "num_outs": num_outs}


def init_bifpn(kg, in_channels, out_channels, target_size_list, num_outs, stack=1):
    in_channels = list(in_channels)
    backbone_end_level = len(in_channels)          # end_level == -1
    extra_ops = []
    for i in range(backbone_end_level, num_outs):
        in_c = in_channels[-1]
        extra_ops.append(init_resample(kg, in_c, out_channels,
                                       target_size_list[i], apply_bn=True))
        in_channels.append(out_channels)
    stacks = []
    for _ in range(stack):
        stacks.append(init_bifpn_layer(kg, in_channels, out_channels,
                                       target_size_list, num_outs))
        in_channels = [out_channels] * num_outs
    return {"extra_ops": extra_ops, "stacks": stacks, "num_outs": num_outs}


# ------------------------------- forward pass ------------------------------

def resample_fwd(x, p):
    if p["conv"] is not None:
        W, b = p["conv"]
        x = pointwise_conv(x, W, b)
    return _resize(x, p["target"])


def weighted_merge_fwd(inputs, p):
    w = jax.nn.relu(p["weight"])
    w = w / (jnp.sum(w) + MERGE_EPS)
    resampled = [resample_fwd(x, rp) for x, rp in zip(inputs, p["resample"])]
    return fused_weighted_merge(w, resampled, p["dw_w"], p["pw_w"], p["pw_b"])


def bifpn_layer_fwd(inputs, layer):
    num_outs = layer["num_outs"]
    md_x = []
    for i in range(num_outs - 1, 0, -1):
        if i < num_outs - 1:
            inputs_list = [md_x[-1], inputs[i - 1]]
        else:
            inputs_list = [inputs[i], inputs[i - 1]]
        x = weighted_merge_fwd(inputs_list, layer["top_down"][num_outs - i - 1])
        md_x.append(x)
    outputs = md_x[::-1]
    for i in range(1, num_outs - 1):
        outputs[i] = weighted_merge_fwd([outputs[i], inputs[i], outputs[i - 1]],
                                        layer["bottom_up"][i - 1])
    outputs.append(weighted_merge_fwd([inputs[-1], outputs[-1]],
                                      layer["bottom_up"][-1]))
    return outputs


def bifpn_forward(params, inputs_nchw):
    # NCHW -> NHWC for the kernels
    outs = [jnp.transpose(x, (0, 2, 3, 1)).astype(jnp.float32) for x in inputs_nchw]
    for ep in params["extra_ops"]:
        outs.append(resample_fwd(outs[-1], ep))
    for layer in params["stacks"]:
        outs = bifpn_layer_fwd(outs, layer)
    outs = outs[:params["num_outs"]]
    # NHWC -> NCHW to match PyTorch output convention
    return tuple(jnp.transpose(o, (0, 3, 1, 2)) for o in outs)


# ----------------------------------- main -----------------------------------

if __name__ == "__main__":
    # Small synthetic configuration (square FPN levels with stride-2 pyramid):
    in_channels = [8, 16, 32]
    out_channels = 16
    num_outs = 5
    target_size_list = [32, 16, 8, 4, 2]
    batch = 2

    kg = key_gen(0)
    params = init_bifpn(kg, in_channels, out_channels, target_size_list,
                        num_outs, stack=1)

    dkey = jax.random.PRNGKey(0)
    k0, k1, k2 = jax.random.split(dkey, 3)
    inputs_nchw = [
        jax.random.normal(k0, (batch, 8, 32, 32), jnp.float32),
        jax.random.normal(k1, (batch, 16, 16, 16), jnp.float32),
        jax.random.normal(k2, (batch, 32, 8, 8), jnp.float32),
    ]

    outs = bifpn_forward(params, inputs_nchw)
    outs = jax.block_until_ready(outs)

    expected_shapes = [(batch, out_channels, s, s) for s in target_size_list]
    assert len(outs) == num_outs
    for o, es in zip(outs, expected_shapes):
        assert o.shape == es, (o.shape, es)
        assert bool(jnp.all(jnp.isfinite(o)))

    print("KERNEL_OK")
</pallas_src>

<mosaic_0001>
module attributes {stable_mosaic.version = 11 : i64} {
  func.func @_pw_kernel(%arg0: i32, %arg1: memref<64x32xf32, #tpu.memory_space<vmem>>, %arg2: memref<32x16xf32, #tpu.memory_space<vmem>>, %arg3: memref<1x16xf32, #tpu.memory_space<vmem>>, %arg4: memref<64x16xf32, #tpu.memory_space<vmem>>) attributes {dimension_semantics = [#tpu.dimension_semantics<parallel>], iteration_bounds = array<i64: 2>, scalar_prefetch = 0 : i64, scratch_operands = 0 : i64, tpu.core_type = #tpu.core_type<tc>, window_params = [{transform_indices = @transform_0, window_bounds = array<i64: 64, 32>}, {pipeline_mode = #tpu.pipeline_mode<synchronous>, transform_indices = @transform_1, window_bounds = array<i64: 32, 16>}, {pipeline_mode = #tpu.pipeline_mode<synchronous>, transform_indices = @transform_2, window_bounds = array<i64: 1, 16>}, {transform_indices = @transform_3, window_bounds = array<i64: 64, 16>}]} {
    %c0 = arith.constant 0 : index
    %c0_0 = arith.constant 0 : index
    %0 = vector.load %arg1[%c0, %c0_0] : memref<64x32xf32, #tpu.memory_space<vmem>>, vector<64x32xf32>
    %c0_1 = arith.constant 0 : index
    %c0_2 = arith.constant 0 : index
    %1 = vector.load %arg2[%c0_1, %c0_2] : memref<32x16xf32, #tpu.memory_space<vmem>>, vector<32x16xf32>
    %cst = arith.constant dense<0.000000e+00> : vector<64x16xf32>
    %2 = tpu.matmul %0, %1, %cst {dimension_numbers = #tpu.dot_dimension_numbers<[1], [0], [0], [1], [0, 0, 1, 1], [], []>} : vector<64x32xf32>, vector<32x16xf32>, vector<64x16xf32> -> vector<64x16xf32>
    %c0_3 = arith.constant 0 : index
    %c0_4 = arith.constant 0 : index
    %3 = vector.load %arg3[%c0_3, %c0_4] : memref<1x16xf32, #tpu.memory_space<vmem>>, vector<1x16xf32>
    %4 = vector.broadcast %3 : vector<1x16xf32> to vector<64x16xf32>
    %5 = arith.addf %2, %4 : vector<64x16xf32>
    %c0_5 = arith.constant 0 : index
    %c0_6 = arith.constant 0 : index
    %6 = vector.load %arg4[%c0_5, %c0_6] : memref<64x16xf32, #tpu.memory_space<vmem>>, vector<64x16xf32>
    tpu.vector_store %arg4[%c0_5, %c0_6], %5 {strides = array<i32>} : memref<64x16xf32, #tpu.memory_space<vmem>>, vector<64x16xf32>,
    return
  }
  func.func @transform_0(%arg0: i32) -> (i32, i32) {
    %c0_i32 = arith.constant 0 : i32
    %c0_i32_0 = arith.constant 0 : i32
    return %arg0, %c0_i32 : i32, i32
  }
  func.func @transform_1(%arg0: i32) -> (i32, i32) {
    %c0_i32 = arith.constant 0 : i32
    %c0_i32_0 = arith.constant 0 : i32
    %c0_i32_1 = arith.constant 0 : i32
    return %c0_i32, %c0_i32_0 : i32, i32
  }
  func.func @transform_2(%arg0: i32) -> (i32, i32) {
    %c0_i32 = arith.constant 0 : i32
    %c0_i32_0 = arith.constant 0 : i32
    %c0_i32_1 = arith.constant 0 : i32
    return %c0_i32, %c0_i32_0 : i32, i32
  }
  func.func @transform_3(%arg0: i32) -> (i32, i32) {
    %c0_i32 = arith.constant 0 : i32
    %c0_i32_0 = arith.constant 0 : i32
    return %arg0, %c0_i32 : i32, i32
  }
}

</mosaic_0001>

<bundles_post_ra>
// kernel: tpu_custom_call.1
= control target key start
LH: loop header
LB: loop body
LE: loop exit
PB: predicated region body
PF: predicated region fallthrough
CT: control target
= control target key end

     0   :  { %s488_s12 = smov 0   ;;  %s536_s0 = inlined_call_operand.vmem [shape: f32[128,32], index: 0, kind: input, shape index: {}]   ;;  %s537_s1 = inlined_call_operand.vmem [shape: f32[32,16], index: 1, kind: input, shape index: {}]   ;;  %s538_s2 = inlined_call_operand.vmem [shape: f32[1,16], index: 2, kind: input, shape index: {}]   ;;  %s539_s3 = inlined_call_operand.vmem [shape: f32[128,16], index: 3, kind: output, shape index: {}]  }
   0x1 LB: > { %s388_s13 = sadd.s32 4294967295, %s466_s12   ;;  %p392_p0 = scmp.ge.s32.totalorder %s466_s12, 1  ;;  %s466_s12 = sphi %s488_s12, %s13_s12  }
   0x2   : > { %p138_p1 = scmp.lt.s32.totalorder %s466_s12, 3 }
   0x4   : > { %p139_p2 = pnand %p392_p0, %p138_p1 }
   0x5   : > { %v182_v0 = vld [vmem:[%s537_s1] sm:$0xff] (!%p139_p2)  ;;  %v183_v1 = vld [vmem:[%s537_s1 + $0x8] sm:$0xff] (!%p139_p2)  ;;  %v184_v2 = vld [vmem:[%s537_s1 + $0x10] sm:$0xff] (!%p139_p2)  ;;  %s393_s20 = sshll.u32 (!%p139_p2), %s388_s13, 3  ;;  %vm193_vm0 = vcmask (!%p139_p2), 261120   ;;  %vm323_vm1 = vcmask (!%p139_p2), 130048  }
   0x6   : > { %142 = sbr.rel (%p139_p2) target bundleno = 239 (0xef), region = 32  ;;  %v440_v3 = vpack.c.bf16 (!%p139_p2), %v183_v1, %v182_v0  ;;  %v185_v4 = vld [vmem:[%s537_s1 + $0x18] sm:$0xff] (!%p139_p2)  ;;  %p163_p3 = scmp.lt.s32.totalorder (!%p139_p2), %s393_s20, 15  ;;  %v397_v14 = vld [vmem:[%s538_s2] ss:$0 sm:$0xff] (!%p139_p2) }
   0x7   : > { %v444_v5 = vpack.c.bf16 (!%p139_p2), %v185_v4, %v184_v2 }
   0x8   : > { %441 = vmatprep.subr.bf16.mxu0 (!%p139_p2), %v440_v3  ;;  %448 = vmatprep.subr.bf16.mxu1 (!%p139_p2), %v440_v3 }
   0x9   : > { %443 = vmatpush3.bf16.msra.mxu0 (!%p139_p2), %v440_v3  ;;  %450 = vmatpush3.bf16.msra.mxu1 (!%p139_p2), %v440_v3 }
   0xa   : > { %445 = vmatprep.subr.bf16.mxu0 (!%p139_p2), %v444_v5  ;;  %449 = vmatprep.subr.bf16.mxu1 (!%p139_p2), %v444_v5 }
   0xd   : > { %s541_s20 = smov (!%p163_p3, %s393_s20), 15  ;;  %447 = vmatpush3.bf16.msra.mxu0 %v444_v5  ;;  %451 = vmatpush3.bf16.msra.mxu1 %v444_v5 }
   0xe   : > { %s394_s23 = sshll.u32 %s541_s20, 3 }
   0xf   : > { %s166_s26 = scalar_lea.vmem %s536_s0, %s394_s23  ;;  %s172_s4 = scalar_lea.vmem %s539_s3, %s394_s23 }
  0x10   : > { %v174_v6 = vld [vmem:[%s166_s26] sm:$0xff]  ;;  %v175_v8 = vld [vmem:[%s166_s26 + $0x8] sm:$0xff]  ;;  %v176_v10 = vld [vmem:[%s166_s26 + $0x10] sm:$0xff] }
  0x11   : > { %v178_v7 = vld [vmem:[%s166_s26 + $0x20] sm:$0xff]  ;;  %v179_v9 = vld [vmem:[%s166_s26 + $0x28] sm:$0xff]  ;;  %428 = vmatprep.mubr.msk.f32.mxu0 %vm193_vm0, %v174_v6  ;;  %v180_v11 = vld [vmem:[%s166_s26 + $0x30] sm:$0xff] }
  0x12   : > { %434 = vmatprep.mubr.msk.f32.mxu1 %vm193_vm0, %v178_v7  ;;  %429 = vmatmul.mubr.msk.f32.vlgmr.msra.gmra.mrb[0].mxu0 %vm193_vm0, %v175_v8  ;;  %v177_v12 = vld [vmem:[%s166_s26 + $0x18] sm:$0xff] }
  0x13   : > { %435 = vmatmul.mubr.msk.f32.vlgmr.msra.gmra.mrb[0].mxu1 %vm193_vm0, %v179_v9  ;;  %431 = vmatprep.mubr.msk.f32.mxu0 %vm193_vm0, %v176_v10  ;;  %v181_v13 = vld [vmem:[%s166_s26 + $0x38] sm:$0xff] }
  0x14   : > { %437 = vmatprep.mubr.msk.f32.mxu1 %vm193_vm0, %v180_v11 }
  0x16   : > { %432 = vmatmul.mubr.msk.f32.gmra.mrb[2].mxu0 %vm193_vm0, %v177_v12 }
  0x17   : > { %438 = vmatmul.mubr.msk.f32.gmra.mrb[2].mxu1 %vm193_vm0, %v181_v13 }
  0xe5   : > { %v430_v15 = vpop.f32.mrb[0].mxu0 }
  0xe6   : > { %v436_v16 = vpop.f32.mrb[0].mxu1  ;;  %v290_v17 = vadd.f32 %v430_v15, %v397_v14  ;;  %v284_v19 = vpop.f32.mrb[1].mxu0 }
  0xe7   : > { %v310_v18 = vadd.f32 %v436_v16, %v397_v14  ;;  %v304_v20 = vpop.f32.mrb[1].mxu1  ;;  %v285_v21 = vadd.f32 %v397_v14, %v284_v19 }
  0xe8   : > { %v305_v22 = vadd.f32 %v397_v14, %v304_v20  ;;  %325 = vst.msk [vmem:[%s172_s4 + $0x8] sm:$0xff] %vm323_vm1, %v290_v17 }
  0xe9   : > { %329 = vst.msk [vmem:[%s172_s4 + $0x28] sm:$0xff] %vm323_vm1, %v310_v18  ;;  %324 = vst.msk [vmem:[%s172_s4] sm:$0xff] %vm323_vm1, %v285_v21  ;;  %v433_v23 = vpop.f32.mrb[2].mxu0 }
  0xea   : > { %328 = vst.msk [vmem:[%s172_s4 + $0x20] sm:$0xff] %vm323_vm1, %v305_v22  ;;  %v439_v24 = vpop.f32.mrb[2].mxu1  ;;  %v300_v25 = vadd.f32 %v433_v23, %v397_v14  ;;  %v294_v27 = vpop.f32.mrb[3].mxu0 }
  0xeb   : > { %v320_v26 = vadd.f32 %v439_v24, %v397_v14  ;;  %v314_v28 = vpop.f32.mrb[3].mxu1  ;;  %v295_v29 = vadd.f32 %v397_v14, %v294_v27 }
  0xec   : > { %v315_v30 = vadd.f32 %v397_v14, %v314_v28  ;;  %327 = vst.msk [vmem:[%s172_s4 + $0x18] sm:$0xff] %vm323_vm1, %v300_v25 }
  0xed   : > { %331 = vst.msk [vmem:[%s172_s4 + $0x38] sm:$0xff] %vm323_vm1, %v320_v26  ;;  %326 = vst.msk [vmem:[%s172_s4 + $0x10] sm:$0xff] %vm323_vm1, %v295_v29 }
  0xee   : > { %330 = vst.msk [vmem:[%s172_s4 + $0x30] sm:$0xff] %vm323_vm1, %v315_v30 }
  0xef PF: > { %s13_s12 = sadd.s32 1, %s466_s12  }
  0xf0   : > { %p10_p4 = scmp.ge.s32.totalorder %s13_s12, 4  }
  0xf2   :  { %12 = sbr.rel (!%p10_p4) target bundleno = 1 (0x1), region = 62 }

</bundles_post_ra>
